<compile_context>
chip_gen: v5e
topology: v5e:2x2
jax: 0.10.0
libtpu: 0.0.40
codegen_flags: <defaults>
</compile_context>

<pallas_src>
import functools

import jax
import jax.numpy as jnp
from jax.experimental import pallas as pl
from jax.experimental.pallas import tpu as pltpu


def _mc_maxpool_kernel(x_ref, sel_ref, o_ref, *, shifts, lc):
    """One grid step.

    x_ref:   (rows_block, L) -- G chunks per row; chunk g holds the k input
             rows (k*W lanes) of output row g of this group.
    sel_ref: (lc, G*Wo) 0/1 matrix with sel[g*k*W + j*k, g*Wo + j] = 1.
    o_ref:   (rows_block, G*Wo)
    """
    v = x_ref[...]                                  # contiguous block load
    # Window max: base lane of output (g, j) is g*k*W + j*k; the other k*k-1
    # window elements sit at static lane offsets `shifts` to its right.
    m = v[:, 0:lc]
    for d in shifts[1:]:
        m = jnp.maximum(m, v[:, d:d + lc])          # VPU max + XLU lane shift

    # Compaction: one 0/1 selection matmul on the MXU.  Exactly one nonzero
    # product per output element -> exact.
    out = jax.lax.dot_general(
        m, sel_ref[...], (((1,), (0,)), ((), ())),
        precision=jax.lax.Precision.HIGHEST,
        preferred_element_type=jnp.float32)
    o_ref[...] = out.astype(o_ref.dtype)


def mc_max_pool2d(x, kernel_size=2, stride=2):
    """Pallas equivalent of MC_MaxPool2d.forward.

    x: [num_MC, B, C, H, W]  ->  [num_MC, B, C, Ho, Wo]
    """
    assert x.ndim == 5, "expected [num_MC, Batch, C, H, W]"
    # TODO(synk): overlapping windows (stride != kernel_size) not implemented.
    assert kernel_size == stride, "non-overlapping windows only (module default k=s=2)"
    k = int(kernel_size)

    mc, b, c, h, w = x.shape
    ho, wo = h // k, w // k
    assert ho >= 1 and wo >= 1, "spatial dims smaller than the pooling window"
    n = mc * b * c
    r = n * ho                         # one k*W chunk per pooled output row
    dt = x.dtype
    dsize = x.dtype.itemsize

    # Rows max_pool2d ignores (H % k != 0): trim (copy only in that rare
    # case).  Ignored trailing columns are simply never selected below.
    if h != k * ho:
        x = x[..., : k * ho, :]
    flat = x.reshape(r, k * w)         # free row-major reshape

    # ---- lane-density grouping -------------------------------------------
    # Pack G consecutive chunks per kernel row (G | R so the reshape is free).
    # Cap at 512 input lanes: keeps the selection matmul (K = G*k*W) well
    # under the HBM roofline on v5e/v6e/v7x while making input rows >= 2 KiB
    # and output rows >= 512 B (lane-dense DMA / unmasked stores).
    lane_target = 512
    g_cap = max(1, min(lane_target // (k * w), r))
    g = 1
    for cand in range(g_cap, 0, -1):
        if r % cand == 0:
            g = cand
            break
    rg = r // g
    L = g * k * w
    wog = g * wo
    xg = flat.reshape(rg, L)           # free

    # All k*k window offsets relative to the base lane g*k*W + j*k.
    shifts = [p * w + q for p in range(k) for q in range(k)]
    lc = L - shifts[-1]                # every selected lane index is < lc

    # 0/1 selection matrix: sel[g0*k*W + j*k, g0*Wo + j] = 1.
    row_i = jax.lax.broadcasted_iota(jnp.int32, (lc, wog), 0)
    col_i = jax.lax.broadcasted_iota(jnp.int32, (lc, wog), 1)
    sel = (row_i == (col_i // wo) * (k * w) + (col_i % wo) * k).astype(dt)

    # Row tile: double-buffered in+out footprint <= ~10 MiB (fits default
    # scoped VMEM everywhere with headroom for the in-kernel temporaries),
    # multiple of 8 sublanes, far above the ~0.35us per-step overhead.
    budget = 10 * 1024 * 1024
    per_row = 2 * (L + wog) * dsize
    rows_block = max(8, min(budget // max(per_row, 1), 4096))
    rows_block -= rows_block % 8
    if rows_block >= rg:
        rows_block = rg
    grid = (pl.cdiv(rg, rows_block),)

    out = pl.pallas_call(
        functools.partial(_mc_maxpool_kernel, shifts=shifts, lc=lc),
        out_shape=jax.ShapeDtypeStruct((rg, wog), dt),
        grid_spec=pltpu.PrefetchScalarGridSpec(
            num_scalar_prefetch=0,
            grid=grid,
            in_specs=[
                pl.BlockSpec((rows_block, L), lambda i: (i, 0)),
                pl.BlockSpec((lc, wog), lambda i: (0, 0)),
            ],
            out_specs=pl.BlockSpec((rows_block, wog), lambda i: (i, 0)),
        ),
        compiler_params=pltpu.CompilerParams(
            dimension_semantics=("parallel",),
            vmem_limit_bytes=32 * 1024 * 1024,
        ),
        cost_estimate=pl.CostEstimate(
            flops=int(rg * (len(shifts) - 1) * lc + 2 * rg * lc * wog),
            transcendentals=0,
            bytes_accessed=int((rg * (L + wog) + lc * wog) * dsize),
        ),
    )(xg, sel)

    # free reshape back to the PyTorch layout
    return out.reshape(mc, b, c, ho, wo)


if __name__ == "__main__":
    key = jax.random.PRNGKey(0)
    num_MC, B, C, H, W = 2, 2, 4, 16, 16
    x = jax.random.normal(key, (num_MC, B, C, H, W), dtype=jnp.float32)

    y = jax.block_until_ready(mc_max_pool2d(x, kernel_size=2, stride=2))

    # pure-JAX reference of the PyTorch forward (permutes cancel out)
    ref = jnp.max(x.reshape(num_MC, B, C, H // 2, 2, W // 2, 2), axis=(4, 6))

    assert y.shape == (num_MC, B, C, H // 2, W // 2), y.shape
    assert y.dtype == x.dtype
    assert jnp.allclose(y, ref), "mismatch vs reference max pool"

    print("KERNEL_OK")
</pallas_src>

<mosaic_0001>
module attributes {stable_mosaic.version = 11 : i64} {
  func.func @_mc_maxpool_kernel(%arg0: i32, %arg1: memref<8x512xf32, #tpu.memory_space<vmem>>, %arg2: memref<495x128xf32, #tpu.memory_space<vmem>>, %arg3: memref<8x128xf32, #tpu.memory_space<vmem>>) attributes {dimension_semantics = [#tpu.dimension_semantics<parallel>], iteration_bounds = array<i64: 1>, scalar_prefetch = 0 : i64, scratch_operands = 0 : i64, tpu.core_type = #tpu.core_type<tc>, window_params = [{transform_indices = @transform_0, window_bounds = array<i64: 8, 512>}, {pipeline_mode = #tpu.pipeline_mode<synchronous>, transform_indices = @transform_1, window_bounds = array<i64: 495, 128>}, {transform_indices = @transform_2, window_bounds = array<i64: 8, 128>}]} {
    %c0 = arith.constant 0 : index
    %c0_0 = arith.constant 0 : index
    %0 = vector.load %arg1[%c0, %c0_0] : memref<8x512xf32, #tpu.memory_space<vmem>>, vector<8x512xf32>
    %1 = vector.extract_strided_slice %0 {offsets = [0, 0], sizes = [8, 495], strides = [1, 1]} : vector<8x512xf32> to vector<8x495xf32>
    %2 = vector.extract_strided_slice %0 {offsets = [0, 1], sizes = [8, 495], strides = [1, 1]} : vector<8x512xf32> to vector<8x495xf32>
    %3 = arith.maximumf %1, %2 : vector<8x495xf32>
    %4 = vector.extract_strided_slice %0 {offsets = [0, 16], sizes = [8, 495], strides = [1, 1]} : vector<8x512xf32> to vector<8x495xf32>
    %5 = arith.maximumf %3, %4 : vector<8x495xf32>
    %6 = vector.extract_strided_slice %0 {offsets = [0, 17], sizes = [8, 495], strides = [1, 1]} : vector<8x512xf32> to vector<8x495xf32>
    %7 = arith.maximumf %5, %6 : vector<8x495xf32>
    %c0_1 = arith.constant 0 : index
    %c0_2 = arith.constant 0 : index
    %8 = vector.load %arg2[%c0_1, %c0_2] : memref<495x128xf32, #tpu.memory_space<vmem>>, vector<495x128xf32>
    %cst = arith.constant dense<0.000000e+00> : vector<8x128xf32>
    %9 = tpu.matmul %7, %8, %cst {dimension_numbers = #tpu.dot_dimension_numbers<[1], [0], [0], [1], [0, 0, 1, 1], [], []>, precision = #tpu.contract_precision<fp32>} : vector<8x495xf32>, vector<495x128xf32>, vector<8x128xf32> -> vector<8x128xf32>
    %c0_3 = arith.constant 0 : index
    %c0_4 = arith.constant 0 : index
    %10 = vector.load %arg3[%c0_3, %c0_4] : memref<8x128xf32, #tpu.memory_space<vmem>>, vector<8x128xf32>
    tpu.vector_store %arg3[%c0_3, %c0_4], %9 {strides = array<i32>} : memref<8x128xf32, #tpu.memory_space<vmem>>, vector<8x128xf32>,
    return
  }
  func.func @transform_0(%arg0: i32) -> (i32, i32) {
    %c0_i32 = arith.constant 0 : i32
    %c0_i32_0 = arith.constant 0 : i32
    return %arg0, %c0_i32 : i32, i32
  }
  func.func @transform_1(%arg0: i32) -> (i32, i32) {
    %c0_i32 = arith.constant 0 : i32
    %c0_i32_0 = arith.constant 0 : i32
    %c0_i32_1 = arith.constant 0 : i32
    return %c0_i32, %c0_i32_0 : i32, i32
  }
  func.func @transform_2(%arg0: i32) -> (i32, i32) {
    %c0_i32 = arith.constant 0 : i32
    %c0_i32_0 = arith.constant 0 : i32
    return %arg0, %c0_i32 : i32, i32
  }
}

</mosaic_0001>

<bundles_post_ra>
// kernel: tpu_custom_call.1
= control target key start
LH: loop header
LB: loop body
LE: loop exit
PB: predicated region body
PF: predicated region fallthrough
CT: control target
= control target key end

     0   :  { %7 = vsyncpa [#allocation3], 0  ;;  %s2677_s0 = inlined_call_operand.hbm [shape: f32[8,512], index: 0, kind: input, shape index: {}]   ;;  %s2678_s1 = inlined_call_operand.hbm [shape: f32[495,128], index: 1, kind: input, shape index: {}]   ;;  %s2679_s2 = inlined_call_operand.hbm [shape: f32[8,128], index: 2, kind: output, shape index: {}]  }
   0x1   :  { %8 = vsyncpa [#allocation6], 0 }
   0x2   :  { %9 = vsyncpa [#allocation4], 0  ;;  %s15_s11 = sshll.u32 %s2677_s0, 4  ;;  %s1623_s12 = smov [#allocation2]   ;;  %s16_s11 = int_to_ptr.hbm [resolvable:$true] %s15_s11 }
   0x3   :  { %s17_s13 = sshll.u32 %s1623_s12, 4  ;;  %s25_s16 = sshll.u32 %s2678_s1, 4  ;;  %s18_s13 = int_to_ptr.vmem [resolvable:$true] %s17_s13  ;;  %s26_s16 = int_to_ptr.hbm [resolvable:$true] %s25_s16 }
   0x4   :  { %20 = dma.hbm_to_vmem [thread:$0]  %s16_s11, 512, %s18_s13, [#allocation3]  }
   0x5   :  { %s1624_s17 = smov [#allocation5]   ;;  %s1625_s19 = smov 128  }
   0x6   :  { %s27_s18 = sshll.u32 %s1624_s17, 4  ;;  %s1626_s20 = smov 8   ;;  %s28_s18 = int_to_ptr.vmem [resolvable:$true] %s27_s18 }
   0x7   :  { %33 = dma.hbm_to_vmem [thread:$0]  %s26_s16, 7936, %s28_s18, [#allocation6], %s1625_s19, %s1625_s19, %s1626_s20  }
   0x8   :  { %1617 = dma.done.wait [#allocation3], 512  }
   0x9   :  { %1618 = vsyncadd [#allocation3], 4294966784 }
   0xa   :  { %1619 = dma.done.wait [#allocation6], 7936  }
   0xb   :  { %1620 = vsyncadd [#allocation6], 4294959360  ;;  %v1652_v0 = vld [vmem:[#allocation2] sm:$0xff]  ;;  %s1627_s0 = smov 112   ;;  %s1628_s21 = smov 127   ;;  %v125_v1 = vld [vmem:[#allocation5 + $0x78] sm:$0xff] }
   0xc   :  { %70 = vrot.lane.b32.xlu1 %v1652_v0, %s1627_s0  ;;  %50 = vrot.lane.b32.xlu0 %v1652_v0, %s1628_s21  ;;  %v124_v2 = vld [vmem:[#allocation5 + $0x70] sm:$0xff]  ;;  %s1629_s1 = smov 111   ;;  %v1660_v3 = vand.u32 4294901760, %v125_v1  ;;  %v123_v5 = vld [vmem:[#allocation5 + $0x68] sm:$0xff]  ;;  %v122_v6 = vld [vmem:[#allocation5 + $0x60] sm:$0xff]  ;;  %vm58_vm0 = vcmask 1039360  }
   0xd   :  { %90 = vrot.lane.b32.xlu2 %v1652_v0, %s1629_s1  ;;  %v1662_v4 = vand.u32 4294901760, %v124_v2  ;;  %v121_v7 = vld [vmem:[#allocation5 + $0x58] sm:$0xff]  ;;  %v1664_v8 = vand.u32 4294901760, %v123_v5  ;;  %v1666_v9 = vand.u32 4294901760, %v122_v6  ;;  %v120_v11 = vld [vmem:[#allocation5 + $0x50] sm:$0xff]  ;;  %v119_v12 = vld [vmem:[#allocation5 + $0x48] sm:$0xff] }
   0xe   :  { %v1668_v10 = vand.u32 4294901760, %v121_v7  ;;  %v118_v13 = vld [vmem:[#allocation5 + $0x40] sm:$0xff]  ;;  %v1671_v14 = vsub.f32 %v125_v1, %v1660_v3  ;;  %376 = vmatpush.msra.mxu3 %v1660_v3  ;;  %180 = vmatpush.msra.mxu0 %v1660_v3  ;;  %v1678_v16 = vand.u32 4294901760, %v120_v11  ;;  %v1680_v17 = vand.u32 4294901760, %v119_v12  ;;  %v1693_v22 = vld [vmem:[#allocation2 + $0x8] sm:$0xff]  ;;  %v117_v35 = vld [vmem:[#allocation5 + $0x38] sm:$0xff] }
   0xf   :  { %v1674_v15 = vsub.f32 %v124_v2, %v1662_v4  ;;  %v1683_v18 = vsub.f32 %v123_v5, %v1664_v8  ;;  %v1686_v19 = vsub.f32 %v122_v6, %v1666_v9  ;;  %v1691_v21 = vand.u32 4294901760, %v118_v13  ;;  %v116_v36 = vld [vmem:[#allocation5 + $0x30] sm:$0xff]  ;;  %v115_v40 = vld [vmem:[#allocation5 + $0x28] sm:$0xff]  ;;  %v114_v42 = vld [vmem:[#allocation5 + $0x20] sm:$0xff]  ;;  %s1630_s22 = smov [#allocation7]   ;;  %s1525_s26 = sshll.u32 %s2679_s2, 4  ;;  %s1526_s26 = int_to_ptr.hbm [resolvable:$true] %s1525_s26 }
  0x10   :  { %v1689_v20 = vsub.f32 %v121_v7, %v1668_v10  ;;  %v222_v23 = vand.u32 4294901760, %v1671_v14  ;;  %323 = vmatpush.msra.mxu2 %v1671_v14  ;;  %378 = vmatpush.msra.mxu3 %v1662_v4  ;;  %v1700_v25 = vsub.f32 %v120_v11, %v1678_v16  ;;  %v1706_v28 = vsub.f32 %v119_v12, %v1680_v17  ;;  %v113_v50 = vld [vmem:[#allocation5 + $0x18] sm:$0xff]  ;;  %v1753_v51 = vld [vmem:[#allocation2 + $0x10] sm:$0xff]  ;;  %v111_v63 = vld [vmem:[#allocation5 + $0x8] sm:$0xff]  ;;  %s1523_s23 = sshll.u32 %s1630_s22, 4  ;;  %s1524_s23 = int_to_ptr.vmem [resolvable:$true] %s1523_s23 }
  0x11   :  { %v228_v24 = vand.u32 4294901760, %v1674_v15  ;;  %v234_v26 = vand.u32 4294901760, %v1683_v18  ;;  %v240_v27 = vand.u32 4294901760, %v1686_v19  ;;  %182 = vmatpush.msra.mxu0 %v1662_v4  ;;  %v1726_v34 = vsub.f32 %v118_v13, %v1691_v21  ;;  %v112_v57 = vld [vmem:[#allocation5 + $0x10] sm:$0xff]  ;;  %v110_v7 = vld [vmem:[#allocation5] sm:$0xff]  ;;  %v141_v12 = vld [vmem:[#allocation5 + $0xf8] sm:$0xff] }
  0x12   :  { %v223_v29 = vsub.f32 %v1671_v14, %v222_v23  ;;  %326 = vmatpush.msra.mxu2 %v1674_v15  ;;  %v246_v31 = vand.u32 4294901760, %v1689_v20  ;;  %380 = vmatpush.msra.mxu3 %v1664_v8  ;;  %v252_v33 = vand.u32 4294901760, %v1700_v25  ;;  %v258_v41 = vand.u32 4294901760, %v1706_v28 }
  0x13   :  { %v229_v30 = vsub.f32 %v1674_v15, %v228_v24  ;;  %v235_v32 = vsub.f32 %v1683_v18, %v234_v26  ;;  %v241_v39 = vsub.f32 %v1686_v19, %v240_v27  ;;  %184 = vmatpush.msra.mxu0 %v1664_v8  ;;  %v1741_v45 = vand.u32 4294901760, %v117_v35 }
  0x14   :  { %72 = vrot.lane.b32.xlu1 %v1693_v22, %s1627_s0  ;;  %52 = vrot.lane.b32.xlu0 %v1693_v22, %s1628_s21  ;;  %v224_v37 = vand.u32 4294901760, %v223_v29  ;;  %v247_v44 = vsub.f32 %v1689_v20, %v246_v31  ;;  %v1743_v46 = vand.u32 4294901760, %v116_v36  ;;  %v253_v47 = vsub.f32 %v1700_v25, %v252_v33 }
  0x15   :  { %92 = vrot.lane.b32.xlu2 %v1693_v22, %s1629_s1  ;;  %v230_v38 = vand.u32 4294901760, %v229_v30  ;;  %329 = vmatpush.msra.mxu2 %v1683_v18  ;;  %v236_v43 = vand.u32 4294901760, %v235_v32  ;;  %v264_v48 = vand.u32 4294901760, %v1726_v34  ;;  %v1751_v49 = vand.u32 4294901760, %v115_v40 }
  0x16   :  { %382 = vmatpush.msra.mxu3 %v1666_v9  ;;  %225 = vmatpush.msra.mxu1 %v224_v37  ;;  %v242_v52 = vand.u32 4294901760, %v241_v39  ;;  %v1757_v53 = vsub.f32 %v117_v35, %v1741_v45  ;;  %v1760_v54 = vsub.f32 %v116_v36, %v1743_v46  ;;  %v1762_v55 = vand.u32 4294901760, %v114_v42  ;;  %v140_v35 = vld [vmem:[#allocation5 + $0xf0] sm:$0xff] }
  0x17   :  { %332 = vmatpush.msra.mxu2 %v1686_v19  ;;  %186 = vmatpush.msra.mxu0 %v1666_v9  ;;  %v259_v56 = vsub.f32 %v1706_v28, %v258_v41  ;;  %v248_v58 = vand.u32 4294901760, %v247_v44  ;;  %v1772_v60 = vsub.f32 %v115_v40, %v1751_v49  ;;  %v1774_v61 = vand.u32 4294901760, %v113_v50 }
  0x18   :  { %384 = vmatpush.msra.mxu3 %v1668_v10  ;;  %231 = vmatpush.msra.mxu1 %v230_v38  ;;  %v270_v59 = vand.u32 4294901760, %v1757_v53  ;;  %v265_v62 = vsub.f32 %v1726_v34, %v264_v48  ;;  %v254_v1 = vand.u32 4294901760, %v253_v47  ;;  %v276_v2 = vand.u32 4294901760, %v1760_v54  ;;  %v45_v38 = vld [vmem:[#allocation2 + $0x18] sm:$0xff]  ;;  %v139_v47 = vld [vmem:[#allocation5 + $0xe8] sm:$0xff] }
  0x19   :  { %335 = vmatpush.msra.mxu2 %v1689_v20  ;;  %188 = vmatpush.msra.mxu0 %v1668_v10  ;;  %v1787_v5 = vsub.f32 %v114_v42, %v1762_v55  ;;  %v1789_v6 = vand.u32 4294901760, %v112_v57  ;;  %v260_v11 = vand.u32 4294901760, %v259_v56  ;;  %v282_v29 = vand.u32 4294901760, %v1772_v60 }
  0x1a   :  { %386 = vmatpush.msra.mxu3 %v1678_v16  ;;  %237 = vmatpush.msra.mxu1 %v236_v43  ;;  %v271_v13 = vsub.f32 %v1757_v53, %v270_v59  ;;  %v1799_v30 = vsub.f32 %v113_v50, %v1774_v61  ;;  %v1801_v32 = vand.u32 4294901760, %v111_v63  ;;  %v266_v36 = vand.u32 4294901760, %v265_v62 }
  0x1b   :  { %338 = vmatpush.msra.mxu2 %v1700_v25  ;;  %190 = vmatpush.msra.mxu0 %v1678_v16  ;;  %v1805_v37 = vand.u32 4294901760, %v110_v7  ;;  %v277_v39 = vsub.f32 %v1760_v54, %v276_v2  ;;  %v2680_v40 = vand.u32 4294901760, %v1787_v5  ;;  %v1813_v42 = vsub.f32 %v112_v57, %v1789_v6 }
  0x1c   :  { %74 = vrot.lane.b32.xlu1 %v1753_v51, %s1627_s0  ;;  %54 = vrot.lane.b32.xlu0 %v1753_v51, %s1628_s21  ;;  %v1815_v43 = vand.u32 4294901760, %v141_v12  ;;  %v1819_v44 = vand.u32 4294901760, %v140_v35  ;;  %v272_v50 = vand.u32 4294901760, %v271_v13  ;;  %v2681_v56 = vand.u32 4294901760, %v1799_v30 }
  0x1d   :  { %94 = vrot.lane.b32.xlu2 %v1753_v51, %s1629_s1  ;;  %243 = vmatpush.msra.mxu1 %v242_v52  ;;  %v283_v52 = vsub.f32 %v1772_v60, %v282_v29  ;;  %v1827_v57 = vsub.f32 %v111_v63, %v1801_v32  ;;  %v2682_v63 = vand.u32 4294901760, %v1813_v42  ;;  %v1842_v13 = vand.u32 4294901760, %v139_v47 }
  0x1e   :  { %341 = vmatpush.msra.mxu2 %v1706_v28  ;;  %388 = vmatpush.msra.mxu3 %v1680_v17  ;;  %v1835_v62 = vsub.f32 %v141_v12, %v1815_v43  ;;  %v2716_v20 = vand.u32 4294901760, %v1787_v5  ;;  %vm78_vm1 = vcmask 916480   ;;  %vm98_vm2 = vcmask 908288  }
  0x1f   :  { %249 = vmatpush.msra.mxu1 %v248_v58  ;;  %192 = vmatpush.msra.mxu0 %v1680_v17  ;;  %v1832_v58 = vsub.f32 %v110_v7, %v1805_v37  ;;  %v1847_v7 = vsub.f32 %v140_v35, %v1819_v44  ;;  %v284_v12 = vand.u32 4294901760, %v283_v52  ;;  %v301_v35 = vsub.f32 %v1813_v42, %v2682_v63 }
  0x20   :  { %344 = vmatpush.msra.mxu2 %v1726_v34  ;;  %390 = vmatpush.msra.mxu3 %v1691_v21  ;;  %v1863_v52 = vsub.f32 %v139_v47, %v1842_v13  ;;  %v2719_v25 = vand.u32 4294901760, %v1827_v57  ;;  %vm175_vm3 = vcmask 1046528  }
  0x21   :  { %255 = vmatpush.msra.mxu1 %v254_v1  ;;  %194 = vmatpush.msra.mxu0 %v1691_v21  ;;  %v278_v1 = vand.u32 4294901760, %v277_v39  ;;  %v2684_v39 = vand.u32 4294901760, %v1835_v62  ;;  %v302_v63 = vand.u32 4294901760, %v301_v35 }
  0x22   :  { %347 = vmatpush.msra.mxu2 %v1757_v53  ;;  %392 = vmatpush.msra.mxu3 %v1741_v45 }
  0x23   :  { %261 = vmatpush.msra.mxu1 %v260_v11  ;;  %v289_v11 = vsub.f32 %v1787_v5, %v2680_v40  ;;  %196 = vmatpush.msra.mxu0 %v1741_v45  ;;  %v564_v47 = vsub.f32 %v1835_v62, %v2684_v39 }
  0x24   :  { %56 = vrot.lane.b32.xlu0 %v45_v38, %s1628_s21  ;;  %76 = vrot.lane.b32.xlu1 %v45_v38, %s1627_s0 }
  0x25   :  { %96 = vrot.lane.b32.xlu2 %v45_v38, %s1629_s1  ;;  %267 = vmatpush.msra.mxu1 %v266_v36  ;;  %v295_v36 = vsub.f32 %v1799_v30, %v2681_v56  ;;  %v2683_v38 = vand.u32 4294901760, %v1827_v57  ;;  %v290_v40 = vand.u32 4294901760, %v289_v11  ;;  %v569_v56 = vand.u32 4294901760, %v1847_v7 }
  0x26   :  { %350 = vmatpush.msra.mxu2 %v1760_v54  ;;  %394 = vmatpush.msra.mxu3 %v1743_v46 }
  0x27   :  { %273 = vmatpush.msra.mxu1 %v272_v50  ;;  %198 = vmatpush.msra.mxu0 %v1743_v46  ;;  %v2685_v50 = vand.u32 4294901760, %v1832_v58  ;;  %v307_v11 = vsub.f32 %v1827_v57, %v2683_v38  ;;  %v570_v38 = vsub.f32 %v1847_v7, %v569_v56 }
  0x28   :  { %353 = vmatpush.msra.mxu2 %v1772_v60  ;;  %396 = vmatpush.msra.mxu3 %v1751_v49 }
  0x29   :  { %279 = vmatpush.msra.mxu1 %v278_v1  ;;  %v296_v1 = vand.u32 4294901760, %v295_v36  ;;  %200 = vmatpush.msra.mxu0 %v1751_v49  ;;  %v575_v36 = vand.u32 4294901760, %v1863_v52  ;;  %v308_v39 = vand.u32 4294901760, %v307_v11  ;;  %v138_v11 = vld [vmem:[#allocation5 + $0xe0] sm:$0xff] }
  0x2a   :  { %356 = vmatpush.msra.mxu2 %v1787_v5  ;;  %398 = vmatpush.msra.mxu3 %v1762_v55 }
  0x2b   :  { %285 = vmatpush.msra.mxu1 %v284_v12  ;;  %202 = vmatpush.msra.mxu0 %v1762_v55  ;;  %v313_v12 = vsub.f32 %v1832_v58, %v2685_v50  ;;  %v576_v50 = vsub.f32 %v1863_v52, %v575_v36 }
  0x2c   :  { %359 = vmatpush.msra.mxu2 %v1799_v30  ;;  %400 = vmatpush.msra.mxu3 %v1774_v61 }
  0x2d   :  { %291 = vmatpush.msra.mxu1 %v290_v40  ;;  %204 = vmatpush.msra.mxu0 %v1774_v61  ;;  %v565_v40 = vand.u32 4294901760, %v564_v47  ;;  %v314_v35 = vand.u32 4294901760, %v313_v12  ;;  %v1902_v47 = vand.u32 4294901760, %v138_v11 }
  0x2e   :  { %362 = vmatpush.msra.mxu2 %v1813_v42  ;;  %402 = vmatpush.msra.mxu3 %v1789_v6 }
  0x2f   :  { %297 = vmatpush.msra.mxu1 %v296_v1  ;;  %206 = vmatpush.msra.mxu0 %v1789_v6  ;;  %v571_v1 = vand.u32 4294901760, %v570_v38 }
  0x30   :  { %365 = vmatpush.msra.mxu2 %v1827_v57  ;;  %404 = vmatpush.msra.mxu3 %v1801_v32  ;;  %v130_v57 = vld [vmem:[#allocation5 + $0xa0] sm:$0xff] }
  0x31   :  { %303 = vmatpush.msra.mxu1 %v302_v63  ;;  %208 = vmatpush.msra.mxu0 %v1801_v32  ;;  %v577_v63 = vand.u32 4294901760, %v576_v50 }
  0x32   :  { %368 = vmatpush.msra.mxu2 %v1832_v58  ;;  %406 = vmatpush.msra.mxu3 %v1805_v37 }
  0x33   :  { %309 = vmatpush.msra.mxu1 %v308_v39  ;;  %210 = vmatpush.msra.mxu0 %v1805_v37  ;;  %v2016_v39 = vand.u32 4294901760, %v130_v57 }
  0x34   :  { %521 = vmatpush.msrb.mxu2 %v1815_v43  ;;  %566 = vmatpush.msrb.mxu3 %v565_v40  ;;  %v129_v40 = vld [vmem:[#allocation5 + $0x98] sm:$0xff] }
  0x35   :  { %315 = vmatpush.msra.mxu1 %v314_v35  ;;  %417 = vmatpush.msrb.mxu0 %v222_v23  ;;  %v2717_v23 = vand.u32 4294901760, %v1799_v30 }
  0x36   :  { %523 = vmatpush.msrb.mxu2 %v1819_v44  ;;  %572 = vmatpush.msrb.mxu3 %v571_v1 }
  0x37   :  { %484 = vmatpush.msrb.mxu1 %v1660_v3  ;;  %421 = vmatpush.msrb.mxu0 %v228_v24  ;;  %v137_v3 = vld [vmem:[#allocation5 + $0xd8] sm:$0xff]  ;;  %v2718_v24 = vand.u32 4294901760, %v1813_v42 }
  0x38   :  { %525 = vmatpush.msrb.mxu2 %v1842_v13  ;;  %578 = vmatpush.msrb.mxu3 %v577_v63  ;;  %v2032_v63 = vsub.f32 %v130_v57, %v2016_v39 }
  0x39   :  { %486 = vmatpush.msrb.mxu1 %v1662_v4  ;;  %425 = vmatpush.msrb.mxu0 %v234_v26  ;;  %v1930_v4 = vsub.f32 %v138_v11, %v1902_v47  ;;  %v135_v26 = vld [vmem:[#allocation5 + $0xc8] sm:$0xff]  ;;  %v2029_v11 = vand.u32 4294901760, %v129_v40 }
  0x3a   :  { %527 = vmatpush.msrb.mxu2 %v1902_v47 }
  0x3b   :  { %488 = vmatpush.msrb.mxu1 %v1664_v8  ;;  %429 = vmatpush.msrb.mxu0 %v240_v27  ;;  %v136_v8 = vld [vmem:[#allocation5 + $0xd0] sm:$0xff]  ;;  %v1970_v27 = vand.u32 4294901760, %v135_v26 }
  0x3c   :  { %v1939_v14 = vand.u32 4294901760, %v136_v8 }
  0x3d   :  { %490 = vmatpush.msrb.mxu1 %v1666_v9  ;;  %433 = vmatpush.msrb.mxu0 %v246_v31  ;;  %v1932_v9 = vand.u32 4294901760, %v137_v3  ;;  %v2720_v31 = vand.u32 4294901760, %v1832_v58 }
  0x3e   :  { %v1973_v28 = vsub.f32 %v136_v8, %v1939_v14  ;;  %v128_v8 = vld [vmem:[#allocation5 + $0x90] sm:$0xff] }
  0x3f   :  { %492 = vmatpush.msrb.mxu1 %v1668_v10  ;;  %437 = vmatpush.msrb.mxu0 %v252_v33  ;;  %v581_v10 = vand.u32 4294901760, %v1930_v4  ;;  %v1942_v15 = vsub.f32 %v137_v3, %v1932_v9  ;;  %v134_v33 = vld [vmem:[#allocation5 + $0xc0] sm:$0xff] }
  0x40   :  { %529 = vmatpush.msrb.mxu2 %v1932_v9  ;;  %v593_v34 = vand.u32 4294901760, %v1973_v28 }
  0x41   :  { %494 = vmatpush.msrb.mxu1 %v1678_v16  ;;  %441 = vmatpush.msrb.mxu0 %v258_v41  ;;  %v582_v16 = vsub.f32 %v1930_v4, %v581_v10  ;;  %v1979_v41 = vand.u32 4294901760, %v134_v33 }
  0x42   :  { %531 = vmatpush.msrb.mxu2 %v1939_v14 }
  0x43   :  { %496 = vmatpush.msrb.mxu1 %v1680_v17  ;;  %445 = vmatpush.msrb.mxu0 %v264_v48  ;;  %v587_v17 = vand.u32 4294901760, %v1942_v15  ;;  %v583_v18 = vand.u32 4294901760, %v582_v16  ;;  %v594_v48 = vsub.f32 %v1973_v28, %v593_v34  ;;  %v1992_v54 = vsub.f32 %v134_v33, %v1979_v41 }
  0x44   :  { %533 = vmatpush.msrb.mxu2 %v1970_v27 }
  0x45   :  { %498 = vmatpush.msrb.mxu1 %v1691_v21  ;;  %449 = vmatpush.msrb.mxu0 %v270_v59  ;;  %v588_v19 = vsub.f32 %v1942_v15, %v587_v17  ;;  %v595_v59 = vand.u32 4294901760, %v594_v48 }
  0x46   :  { %584 = vmatpush.msrb.mxu3 %v583_v18  ;;  %535 = vmatpush.msrb.mxu2 %v1979_v41 }
  0x47   :  { %500 = vmatpush.msrb.mxu1 %v1741_v45  ;;  %453 = vmatpush.msrb.mxu0 %v276_v2  ;;  %v589_v21 = vand.u32 4294901760, %v588_v19  ;;  %v1982_v45 = vsub.f32 %v135_v26, %v1970_v27  ;;  %v2690_v19 = vand.u32 4294901760, %v2032_v63 }
  0x49   :  { %502 = vmatpush.msrb.mxu1 %v1743_v46  ;;  %457 = vmatpush.msrb.mxu0 %v282_v29  ;;  %v133_v46 = vld [vmem:[#allocation5 + $0xb8] sm:$0xff] }
  0x4a   :  { %590 = vmatpush.msrb.mxu3 %v589_v21  ;;  %v1989_v53 = vand.u32 4294901760, %v133_v46  ;;  %v2042_v21 = vsub.f32 %v129_v40, %v2029_v11 }
  0x4b   :  { %504 = vmatpush.msrb.mxu1 %v1751_v49  ;;  %461 = vmatpush.msrb.mxu0 %v2716_v20  ;;  %v599_v49 = vand.u32 4294901760, %v1982_v45  ;;  %v2039_v20 = vand.u32 4294901760, %v128_v8 }
  0x4c   :  { %537 = vmatpush.msrb.mxu2 %v1989_v53  ;;  %v2002_v5 = vsub.f32 %v133_v46, %v1989_v53  ;;  %596 = vmatpush.msrb.mxu3 %v595_v59  ;;  %v2689_v33 = vand.u32 4294901760, %v2042_v21 }
  0x4d   :  { %506 = vmatpush.msrb.mxu1 %v1762_v55  ;;  %465 = vmatpush.msrb.mxu0 %v2717_v23  ;;  %v132_v55 = vld [vmem:[#allocation5 + $0xb0] sm:$0xff]  ;;  %v600_v60 = vsub.f32 %v1982_v45, %v599_v49  ;;  %v127_v23 = vld [vmem:[#allocation5 + $0x88] sm:$0xff] }
  0x4e   :  { %v1999_v2 = vand.u32 4294901760, %v132_v55  ;;  %v611_v42 = vand.u32 4294901760, %v2002_v5  ;;  %v2048_v26 = vand.u32 4294901760, %v127_v23  ;;  %v636_v59 = vsub.f32 %v2042_v21, %v2689_v33 }
  0x4f   :  { %508 = vmatpush.msrb.mxu1 %v1774_v61  ;;  %469 = vmatpush.msrb.mxu0 %v2718_v24  ;;  %v605_v61 = vand.u32 4294901760, %v1992_v54  ;;  %v601_v29 = vand.u32 4294901760, %v600_v60 }
  0x50   :  { %539 = vmatpush.msrb.mxu2 %v1999_v2  ;;  %v612_v12 = vsub.f32 %v2002_v5, %v611_v42 }
  0x51   :  { %510 = vmatpush.msrb.mxu1 %v1789_v6  ;;  %473 = vmatpush.msrb.mxu0 %v2719_v25  ;;  %v131_v6 = vld [vmem:[#allocation5 + $0xa8] sm:$0xff]  ;;  %v606_v30 = vsub.f32 %v1992_v54, %v605_v61  ;;  %v630_v25 = vsub.f32 %v2032_v63, %v2690_v19 }
  0x52   :  { %602 = vmatpush.msrb.mxu3 %v601_v29  ;;  %v613_v3 = vand.u32 4294901760, %v612_v12 }
  0x53   :  { %512 = vmatpush.msrb.mxu1 %v1801_v32  ;;  %477 = vmatpush.msrb.mxu0 %v2720_v31  ;;  %v2008_v32 = vand.u32 4294901760, %v131_v6  ;;  %v607_v58 = vand.u32 4294901760, %v606_v30  ;;  %v2051_v31 = vsub.f32 %v128_v8, %v2039_v20  ;;  %v631_v46 = vand.u32 4294901760, %v630_v25 }
  0x54   :  { %v637_v30 = vand.u32 4294901760, %v636_v59 }
  0x55   :  { %514 = vmatpush.msrb.mxu1 %v1805_v37  ;;  %v2011_v37 = vsub.f32 %v132_v55, %v1999_v2  ;;  %541 = vmatpush.msrb.mxu2 %v2008_v32  ;;  %v2019_v50 = vsub.f32 %v131_v6, %v2008_v32  ;;  %v2688_v48 = vand.u32 4294901760, %v2051_v31  ;;  %v126_v55 = vld [vmem:[#allocation5 + $0x80] sm:$0xff]  ;;  %v2062_v6 = vsub.f32 %v127_v23, %v2048_v26 }
  0x56   :  { %608 = vmatpush.msrb.mxu3 %v607_v58  ;;  %v2059_v60 = vand.u32 4294901760, %v126_v55 }
  0x57   :  { %v617_v38 = vand.u32 4294901760, %v2011_v37  ;;  %543 = vmatpush.msrb.mxu2 %v2016_v39  ;;  %v623_v1 = vand.u32 4294901760, %v2019_v50  ;;  %v642_v29 = vsub.f32 %v2051_v31, %v2688_v48  ;;  %v2687_v57 = vand.u32 4294901760, %v2062_v6 }
  0x58   :  { %614 = vmatpush.msrb.mxu3 %v613_v3  ;;  %v2070_v58 = vsub.f32 %v126_v55, %v2059_v60 }
  0x59   :  { %v618_v35 = vsub.f32 %v2011_v37, %v617_v38  ;;  %v624_v18 = vsub.f32 %v2019_v50, %v623_v1  ;;  %545 = vmatpush.msrb.mxu2 %v2029_v11  ;;  %v643_v12 = vand.u32 4294901760, %v642_v29  ;;  %v648_v40 = vsub.f32 %v2062_v6, %v2687_v57 }
  0x5b   :  { %v619_v16 = vand.u32 4294901760, %v618_v35  ;;  %v625_v24 = vand.u32 4294901760, %v624_v18  ;;  %547 = vmatpush.msrb.mxu2 %v2039_v20  ;;  %v2686_v35 = vand.u32 4294901760, %v2070_v58  ;;  %v649_v3 = vand.u32 4294901760, %v648_v40 }
  0x5d   :  { %620 = vmatpush.msrb.mxu3 %v619_v16  ;;  %549 = vmatpush.msrb.mxu2 %v2048_v26  ;;  %v654_v8 = vsub.f32 %v2070_v58, %v2686_v35 }
  0x5f   :  { %626 = vmatpush.msrb.mxu3 %v625_v24  ;;  %551 = vmatpush.msrb.mxu2 %v2059_v60  ;;  %v655_v16 = vand.u32 4294901760, %v654_v8 }
  0x61   :  { %632 = vmatpush.msrb.mxu3 %v631_v46 }
  0x63   :  { %638 = vmatpush.msrb.mxu3 %v637_v30 }
  0x65   :  { %644 = vmatpush.msrb.mxu3 %v643_v12 }
  0x67   :  { %650 = vmatpush.msrb.mxu3 %v649_v3  ;;  %v91_v18 = vpop.permute.xlu2 %90 }
  0x69   :  { %656 = vmatpush.msrb.mxu3 %v655_v16 }
  0x6f   :  { %v93_v25 = vpop.permute.xlu2 %92 }
  0x70   :  { %v99_v40 = vsel %vm98_vm2, %v91_v18, %v93_v25 }
  0x77   :  { %v95_v8 = vpop.permute.xlu2 %94 }
  0x78   :  { %v100_v18 = vsel %vm98_vm2, %v93_v25, %v95_v8 }
  0x7e   :  { %v71_v23 = vpop.permute.xlu1 %70  ;;  %v51_v24 = vpop.permute.xlu0 %50 }
  0x86   :  { %v73_v46 = vpop.permute.xlu1 %72  ;;  %v53_v55 = vpop.permute.xlu0 %52 }
  0x87   :  { %v59_v59 = vsel %vm58_vm0, %v51_v24, %v53_v55  ;;  %v79_v30 = vsel %vm78_vm1, %v71_v23, %v73_v46 }
  0x88   :  { %v66_v29 = vmax.f32 %v1652_v0, %v59_v59  ;;  %v2721_v59 = vand.u32 4294901760, %v1835_v62 }
  0x8a   :  { %v86_v12 = vmax.f32 %v66_v29, %v79_v30 }
  0x8c   :  { %v106_v3 = vmax.f32 %v86_v12, %v99_v40  ;;  %v149_v40 = vld [vmem:[#allocation5 + $0x138] sm:$0xff] }
  0x8e   :  { %v75_v16 = vpop.permute.xlu1 %74  ;;  %v55_v35 = vpop.permute.xlu0 %54  ;;  %v211_v57 = vand.u32 4294901760, %v106_v3 }
  0x8f   :  { %v60_v48 = vsel %vm58_vm0, %v53_v55, %v55_v35  ;;  %v80_v24 = vsel %vm78_vm1, %v73_v46, %v75_v16 }
  0x90   :  { %v67_v33 = vmax.f32 %v1693_v22, %v60_v48  ;;  %317 = vmatmul.f32.vlgmr.msra.gmra.mxu1 %v211_v57  ;;  %v212_v19 = vsub.f32 %v106_v3, %v211_v57  ;;  %v2094_v22 = vpop.permute.xlu2 %96  ;;  %v2723_v3 = vand.u32 4294901760, %v2042_v21 }
  0x91   :  { %717 = vmatpush.msra.mxu1 %v1815_v43 }
  0x92   :  { %v87_v0 = vmax.f32 %v67_v33, %v80_v24  ;;  %371 = vmatmul.f32.vlgmr.msra.gmra.mxu2 %v212_v19  ;;  %v213_v23 = vand.u32 4294901760, %v212_v19  ;;  %v2724_v24 = vand.u32 4294901760, %v2051_v31 }
  0x93   :  { %719 = vmatpush.msra.mxu1 %v1819_v44  ;;  %758 = vmatpush.msra.mxu2 %v2721_v59 }
  0x94   :  { %v107_v29 = vmax.f32 %v87_v0, %v100_v18  ;;  %410 = vmatmul.f32.vlgmr.msra.gmra.mxu3 %v213_v23  ;;  %v214_v55 = vsub.f32 %v212_v19, %v213_v23  ;;  %v2227_v18 = vand.u32 4294901760, %v149_v40 }
  0x95   :  { %721 = vmatpush.msra.mxu1 %v1842_v13  ;;  %762 = vmatpush.msra.mxu2 %v569_v56 }
  0x96   :  { %825 = vmatpush.msra.mxu3 %v1815_v43  ;;  %v215_v33 = vand.u32 4294901760, %v214_v55  ;;  %v2097_v48 = vpop.permute.xlu0 %56  ;;  %v2099_v25 = vand.u32 4294901760, %v107_v29  ;;  %v2101_v46 = vpop.permute.xlu1 %76 }
  0x97   :  { %723 = vmatpush.msra.mxu1 %v1902_v47  ;;  %766 = vmatpush.msra.mxu2 %v575_v36  ;;  %v61_v19 = vsel %vm58_vm0, %v55_v35, %v2097_v48  ;;  %v81_v56 = vsel %vm78_vm1, %v75_v16, %v2101_v46  ;;  %v101_v36 = vsel %vm98_vm2, %v95_v8, %v2094_v22 }
  0x98   :  { %827 = vmatpush.msra.mxu3 %v1819_v44  ;;  %216 = vmatmul.f32.vlgmr.msra.gmra.mxu0 %v215_v33  ;;  %v68_v43 = vmax.f32 %v1753_v51, %v61_v19  ;;  %v2113_v30 = vsub.f32 %v107_v29, %v2099_v25  ;;  %v2725_v29 = vand.u32 4294901760, %v2062_v6  ;;  %v147_v19 = vld [vmem:[#allocation5 + $0x128] sm:$0xff] }
  0x99   :  { %516 = vmatmul.f32.vlgmr.msrb.gmra.mxu1 %v211_v57  ;;  %664 = vmatpush.msra.mxu0 %v1835_v62 }
  0x9a   :  { %725 = vmatpush.msra.mxu1 %v1932_v9  ;;  %770 = vmatpush.msra.mxu2 %v581_v10  ;;  %v88_v35 = vmax.f32 %v68_v43, %v81_v56  ;;  %v554_v44 = vand.u32 4294901760, %v2113_v30  ;;  %v157_v10 = vld [vmem:[#allocation5 + $0x178] sm:$0xff] }
  0x9b   :  { %829 = vmatpush.msra.mxu3 %v1842_v13  ;;  %667 = vmatpush.msra.mxu0 %v1847_v7  ;;  %v156_v7 = vld [vmem:[#allocation5 + $0x170] sm:$0xff] }
  0x9c   :  { %727 = vmatpush.msra.mxu1 %v1939_v14  ;;  %774 = vmatpush.msra.mxu2 %v587_v17  ;;  %v2127_v51 = vmax.f32 %v88_v35, %v101_v36  ;;  %v555_v62 = vsub.f32 %v2113_v30, %v554_v44  ;;  %v2141_v17 = vand.u32 4294901760, %v157_v10  ;;  %v2255_v35 = vsub.f32 %v149_v40, %v2227_v18 }
  0x9d   :  { %831 = vmatpush.msra.mxu3 %v1902_v47  ;;  %670 = vmatpush.msra.mxu0 %v1863_v52  ;;  %v155_v52 = vld [vmem:[#allocation5 + $0x168] sm:$0xff]  ;;  %v2146_v47 = vand.u32 4294901760, %v156_v7 }
  0x9e   :  { %658 = vmatmul.f32.vlgmr.msrb.gmra.mxu3 %v2099_v25  ;;  %729 = vmatpush.msra.mxu1 %v1970_v27  ;;  %v556_v13 = vand.u32 4294901760, %v555_v62  ;;  %v146_v62 = vld [vmem:[#allocation5 + $0x120] sm:$0xff] }
  0x9f   :  { %778 = vmatpush.msra.mxu2 %v593_v34  ;;  %833 = vmatpush.msra.mxu3 %v1932_v9  ;;  %v154_v9 = vld [vmem:[#allocation5 + $0x160] sm:$0xff]  ;;  %v2156_v34 = vand.u32 4294901760, %v155_v52 }
  0xa0   :  { %673 = vmatpush.msra.mxu0 %v1930_v4  ;;  %731 = vmatpush.msra.mxu1 %v1979_v41  ;;  %v2154_v4 = vsub.f32 %v157_v10, %v2141_v17 }
  0xa1   :  { %782 = vmatpush.msra.mxu2 %v599_v49  ;;  %835 = vmatpush.msra.mxu3 %v1939_v14  ;;  %v153_v14 = vld [vmem:[#allocation5 + $0x158] sm:$0xff]  ;;  %v2166_v49 = vand.u32 4294901760, %v154_v9 }
  0xa2   :  { %479 = vmatmul.f32.vlgmr.msrb.gmra.mxu0 %v211_v57  ;;  %557 = vmatmul.f32.vlgmr.msrb.gmra.mxu2 %v556_v13  ;;  %v2722_v57 = vand.u32 4294901760, %v2032_v63 }
  0xa3   :  { %676 = vmatpush.msra.mxu0 %v1942_v15  ;;  %733 = vmatpush.msra.mxu1 %v1989_v53  ;;  %v2164_v15 = vsub.f32 %v156_v7, %v2146_v47  ;;  %v145_v7 = vld [vmem:[#allocation5 + $0x118] sm:$0xff] }
  0xa4   :  { %786 = vmatpush.msra.mxu2 %v605_v61  ;;  %837 = vmatpush.msra.mxu3 %v1970_v27  ;;  %v2708_v27 = vand.u32 4294901760, %v2154_v4  ;;  %v152_v61 = vld [vmem:[#allocation5 + $0x150] sm:$0xff] }
  0xa5   :  { %679 = vmatpush.msra.mxu0 %v1973_v28  ;;  %735 = vmatpush.msra.mxu1 %v1999_v2  ;;  %v2175_v28 = vsub.f32 %v155_v52, %v2156_v34 }
  0xa6   :  { %790 = vmatpush.msra.mxu2 %v611_v42  ;;  %839 = vmatpush.msra.mxu3 %v1979_v41  ;;  %v2177_v41 = vand.u32 4294901760, %v153_v14  ;;  %v151_v42 = vld [vmem:[#allocation5 + $0x148] sm:$0xff] }
  0xa7   :  { %682 = vmatpush.msra.mxu0 %v1982_v45  ;;  %737 = vmatpush.msra.mxu1 %v2008_v32  ;;  %v2706_v45 = vand.u32 4294901760, %v2164_v15 }
  0xa8   :  { %794 = vmatpush.msra.mxu2 %v617_v38  ;;  %841 = vmatpush.msra.mxu3 %v1989_v53  ;;  %v2186_v53 = vsub.f32 %v154_v9, %v2166_v49  ;;  %v2190_v38 = vand.u32 4294901760, %v152_v61  ;;  %v2200_v12 = vsub.f32 %v153_v14, %v2177_v41  ;;  %v2272_v9 = vand.u32 4294901760, %v146_v62 }
  0xa9   :  { %685 = vmatpush.msra.mxu0 %v1992_v54  ;;  %739 = vmatpush.msra.mxu1 %v2016_v39  ;;  %v150_v54 = vld [vmem:[#allocation5 + $0x140] sm:$0xff] }
  0xaa   :  { %798 = vmatpush.msra.mxu2 %v623_v1  ;;  %843 = vmatpush.msra.mxu3 %v1999_v2  ;;  %v905_v2 = vsub.f32 %v2154_v4, %v2708_v27  ;;  %v2705_v1 = vand.u32 4294901760, %v2175_v28  ;;  %v2704_v8 = vand.u32 4294901760, %v2186_v53  ;;  %v2213_v16 = vand.u32 4294901760, %v150_v54  ;;  %v162_v27 = vld [vmem:[#allocation5 + $0x1a0] sm:$0xff] }
  0xab   :  { %688 = vmatpush.msra.mxu0 %v2002_v5  ;;  %741 = vmatpush.msra.mxu1 %v2029_v11  ;;  %v2204_v5 = vand.u32 4294901760, %v151_v42  ;;  %v2702_v23 = vand.u32 4294901760, %v2200_v12 }
  0xac   :  { %802 = vmatpush.msra.mxu2 %v2722_v57  ;;  %845 = vmatpush.msra.mxu3 %v2008_v32  ;;  %v911_v32 = vsub.f32 %v2164_v15, %v2706_v45  ;;  %v917_v0 = vsub.f32 %v2175_v28, %v2705_v1  ;;  %v923_v55 = vsub.f32 %v2186_v53, %v2704_v8  ;;  %v143_v57 = vld [vmem:[#allocation5 + $0x108] sm:$0xff] }
  0xad   :  { %691 = vmatpush.msra.mxu0 %v2011_v37  ;;  %743 = vmatpush.msra.mxu1 %v2039_v20  ;;  %v2218_v37 = vsub.f32 %v152_v61, %v2190_v38  ;;  %v2232_v59 = vsub.f32 %v151_v42, %v2204_v5  ;;  %v2241_v33 = vsub.f32 %v150_v54, %v2213_v16  ;;  %v2698_v61 = vand.u32 4294901760, %v2255_v35  ;;  %v144_v42 = vld [vmem:[#allocation5 + $0x110] sm:$0xff] }
  0xae   :  { %806 = vmatpush.msra.mxu2 %v2723_v3  ;;  %847 = vmatpush.msra.mxu3 %v2016_v39  ;;  %v906_v39 = vand.u32 4294901760, %v905_v2  ;;  %v918_v43 = vand.u32 4294901760, %v917_v0  ;;  %v929_v36 = vsub.f32 %v2200_v12, %v2702_v23  ;;  %v924_v10 = vand.u32 4294901760, %v923_v55 }
  0xaf   :  { %694 = vmatpush.msra.mxu0 %v2019_v50  ;;  %745 = vmatpush.msra.mxu1 %v2048_v26  ;;  %v148_v50 = vld [vmem:[#allocation5 + $0x130] sm:$0xff]  ;;  %v2699_v13 = vand.u32 4294901760, %v2241_v33  ;;  %v2284_v54 = vand.u32 4294901760, %v145_v7  ;;  %v2294_v3 = vsub.f32 %v146_v62, %v2272_v9 }
  0xb0   :  { %810 = vmatpush.msra.mxu2 %v2724_v24  ;;  %849 = vmatpush.msra.mxu3 %v2029_v11  ;;  %v912_v11 = vand.u32 4294901760, %v911_v32  ;;  %v2247_v56 = vand.u32 4294901760, %v148_v50  ;;  %v930_v14 = vand.u32 4294901760, %v929_v36  ;;  %v2296_v32 = vand.u32 4294901760, %v144_v42  ;;  %v142_v24 = vld [vmem:[#allocation5 + $0x100] sm:$0xff] }
  0xb1   :  { %697 = vmatpush.msra.mxu0 %v2032_v63  ;;  %747 = vmatpush.msra.mxu1 %v2059_v60  ;;  %v2701_v63 = vand.u32 4294901760, %v2218_v37 }
  0xb2   :  { %814 = vmatpush.msra.mxu2 %v2725_v29  ;;  %851 = vmatpush.msra.mxu3 %v2039_v20  ;;  %v2726_v20 = vand.u32 4294901760, %v2070_v58  ;;  %v2270_v52 = vsub.f32 %v148_v50, %v2247_v56  ;;  %v2306_v50 = vsub.f32 %v145_v7, %v2284_v54  ;;  %v2308_v29 = vand.u32 4294901760, %v143_v57 }
  0xb3   :  { %751 = vmatmul.f32.vlgmr.msra.gmra.mxu1 %v554_v44  ;;  %700 = vmatpush.msra.mxu0 %v2042_v21  ;;  %v2700_v21 = vand.u32 4294901760, %v2232_v59  ;;  %v2260_v44 = vand.u32 4294901760, %v147_v19  ;;  %v2318_v55 = vsub.f32 %v144_v42, %v2296_v32 }
  0xb4   :  { %907 = vmatpush.msrb.mxu1 %v906_v39  ;;  %818 = vmatpush.msra.mxu2 %v2726_v20  ;;  %v2697_v40 = vand.u32 4294901760, %v2270_v52  ;;  %v2693_v36 = vand.u32 4294901760, %v2306_v50  ;;  %v2330_v62 = vsub.f32 %v143_v57, %v2308_v29 }
  0xb5   :  { %853 = vmatpush.msra.mxu3 %v2048_v26  ;;  %820 = vmatmul.f32.vlgmr.msra.gmra.mxu2 %v2099_v25  ;;  %v935_v26 = vsub.f32 %v2218_v37, %v2701_v63  ;;  %v164_v63 = vld [vmem:[#allocation5 + $0x1b0] sm:$0xff] }
  0xb6   :  { %913 = vmatpush.msrb.mxu1 %v912_v11  ;;  %1005 = vmatpush.msrb.mxu2 %v2154_v4  ;;  %v2695_v11 = vand.u32 4294901760, %v2294_v3  ;;  %2727 = vst [vmem:[#allocation11_spill] sm:$0xff] %v2330_v62  ;;  %v977_v57 = vsub.f32 %v2306_v50, %v2693_v36  ;;  %v167_v36 = vld [vmem:[#allocation5 + $0x1c8] sm:$0xff]  ;;  %v2434_v8 = vand.u32 4294901760, %v164_v63 }
  0xb7   :  { %703 = vmatpush.msra.mxu0 %v2051_v31  ;;  %855 = vmatpush.msra.mxu3 %v2059_v60  ;;  %v941_v31 = vsub.f32 %v2232_v59, %v2700_v21  ;;  %v2282_v60 = vsub.f32 %v147_v19, %v2260_v44  ;;  %v936_v2 = vand.u32 4294901760, %v935_v26  ;;  %v2320_v19 = vand.u32 4294901760, %v142_v24 }
  0xb8   :  { %857 = vmatmul.f32.vlgmr.msra.gmra.mxu3 %v2099_v25  ;;  %919 = vmatpush.msrb.mxu1 %v918_v43  ;;  %v947_v25 = vsub.f32 %v2241_v33, %v2699_v13  ;;  %v971_v26 = vsub.f32 %v2294_v3, %v2695_v11  ;;  %v166_v11 = vld [vmem:[#allocation5 + $0x1c0] sm:$0xff] }
  0xb9   :  { %1008 = vmatpush.msrb.mxu2 %v2164_v15  ;;  %1058 = vmatpush.msrb.mxu3 %v2141_v17  ;;  %v942_v39 = vand.u32 4294901760, %v941_v31  ;;  %v2696_v0 = vand.u32 4294901760, %v2282_v60  ;;  %v2340_v42 = vsub.f32 %v142_v24, %v2320_v19 }
  0xba   :  { %706 = vmatpush.msra.mxu0 %v2062_v6  ;;  %925 = vmatpush.msrb.mxu1 %v924_v10  ;;  %v953_v6 = vsub.f32 %v2255_v35, %v2698_v61  ;;  %v171_v10 = vld [vmem:[#allocation5 + $0x1e8] sm:$0x7f]  ;;  %v972_v24 = vand.u32 4294901760, %v971_v26  ;;  %v165_v61 = vld [vmem:[#allocation5 + $0x1b8] sm:$0xff] }
  0xbb   :  { %1011 = vmatpush.msrb.mxu2 %v2175_v28  ;;  %1060 = vmatpush.msrb.mxu3 %v2146_v47  ;;  %v965_v43 = vsub.f32 %v2282_v60, %v2696_v0  ;;  %2728 = vst [vmem:[#allocation12_spill] sm:$0xff] %v2340_v42  ;;  %v177_v31 = vsel %vm175_vm3, %v171_v10, 0  ;;  %v2421_v23 = vand.u32 4294901760, %v165_v61 }
  0xbc   :  { %709 = vmatpush.msra.mxu0 %v2070_v58  ;;  %931 = vmatpush.msrb.mxu1 %v930_v14  ;;  %v948_v58 = vand.u32 4294901760, %v947_v25  ;;  %v954_v20 = vand.u32 4294901760, %v953_v6  ;;  %v2691_v14 = vand.u32 4294901760, %v2318_v55  ;;  %v170_v6 = vld [vmem:[#allocation5 + $0x1e0] sm:$0xff] }
  0xbd   :  { %712 = vmatmul.f32.vlgmr.msra.gmra.mxu0 %v2113_v30  ;;  %1014 = vmatpush.msrb.mxu2 %v2186_v53  ;;  %v959_v30 = vsub.f32 %v2270_v52, %v2697_v40  ;;  %v966_v25 = vand.u32 4294901760, %v965_v43  ;;  %v2364_v10 = vand.u32 4294901760, %v170_v6 }
  0xbe   :  { %862 = vmatpush.msrb.mxu0 %v2141_v17  ;;  %1062 = vmatpush.msrb.mxu3 %v2156_v34 }
  0xbf   :  { %937 = vmatpush.msrb.mxu1 %v936_v2  ;;  %1017 = vmatpush.msrb.mxu2 %v2200_v12  ;;  %v960_v7 = vand.u32 4294901760, %v959_v30  ;;  %v2692_v2 = vand.u32 4294901760, %v2330_v62  ;;  %v2356_v30 = vand.u32 4294901760, %v177_v31 }
  0xc0   :  { %864 = vmatpush.msrb.mxu0 %v2146_v47  ;;  %1064 = vmatpush.msrb.mxu3 %v2166_v49 }
  0xc1   :  { %943 = vmatpush.msrb.mxu1 %v942_v39  ;;  %1020 = vmatpush.msrb.mxu2 %v2218_v37  ;;  %v983_v39 = vsub.f32 %v2318_v55, %v2691_v14  ;;  %v989_v43 = vsub.f32 %v2330_v62, %v2692_v2  ;;  %v168_v14 = vld [vmem:[#allocation5 + $0x1d0] sm:$0xff] }
  0xc2   :  { %866 = vmatpush.msrb.mxu0 %v2156_v34  ;;  %1066 = vmatpush.msrb.mxu3 %v2177_v41 }
  0xc3   :  { %949 = vmatpush.msrb.mxu1 %v948_v58  ;;  %1023 = vmatpush.msrb.mxu2 %v2232_v59  ;;  %v2694_v58 = vand.u32 4294901760, %v2340_v42  ;;  %v984_v26 = vand.u32 4294901760, %v983_v39  ;;  %v990_v39 = vand.u32 4294901760, %v989_v43 }
  0xc4   :  { %868 = vmatpush.msrb.mxu0 %v2166_v49  ;;  %1068 = vmatpush.msrb.mxu3 %v2190_v38 }
  0xc5   :  { %955 = vmatpush.msrb.mxu1 %v954_v20  ;;  %1026 = vmatpush.msrb.mxu2 %v2241_v33  ;;  %v978_v20 = vand.u32 4294901760, %v977_v57  ;;  %v2373_v57 = vsub.f32 %v177_v31, %v2356_v30  ;;  %v2388_v31 = vand.u32 4294901760, %v168_v14 }
  0xc6   :  { %870 = vmatpush.msrb.mxu0 %v2177_v41  ;;  %1070 = vmatpush.msrb.mxu3 %v2204_v5 }
  0xc7   :  { %961 = vmatpush.msrb.mxu1 %v960_v7  ;;  %1029 = vmatpush.msrb.mxu2 %v2255_v35  ;;  %v169_v7 = vld [vmem:[#allocation5 + $0x1d8] sm:$0xff]  ;;  %v2703_v40 = vand.u32 4294901760, %v2373_v57  ;;  %v2408_v13 = vsub.f32 %v168_v14, %v2388_v31 }
  0xc8   :  { %872 = vmatpush.msrb.mxu0 %v2190_v38  ;;  %1072 = vmatpush.msrb.mxu3 %v2213_v16  ;;  %v2377_v2 = vand.u32 4294901760, %v169_v7 }
  0xc9   :  { %967 = vmatpush.msrb.mxu1 %v966_v25  ;;  %1032 = vmatpush.msrb.mxu2 %v2270_v52  ;;  %v995_v25 = vsub.f32 %v2340_v42, %v2694_v58  ;;  %v2384_v58 = vsub.f32 %v170_v6, %v2364_v10 }
  0xca   :  { %874 = vmatpush.msrb.mxu0 %v2204_v5  ;;  %1074 = vmatpush.msrb.mxu3 %v2227_v18  ;;  %v2397_v6 = vsub.f32 %v169_v7, %v2377_v2  ;;  %v1544_v7 = vld [vmem:[#allocation2 + $0x18] sm:$0xff] }
  0xcb   :  { %973 = vmatpush.msrb.mxu1 %v972_v24  ;;  %1035 = vmatpush.msrb.mxu2 %v2282_v60  ;;  %v2380_v24 = vand.u32 4294901760, %v2127_v51  ;;  %v996_v0 = vand.u32 4294901760, %v995_v25  ;;  %v2403_v25 = vand.u32 4294901760, %v166_v11  ;;  %v69_v21 = vmax.f32 %v1544_v7, %v2097_v48  ;;  %v163_v7 = vld [vmem:[#allocation5 + $0x1a8] sm:$0xff] }
  0xcc   :  { %876 = vmatpush.msrb.mxu0 %v2213_v16  ;;  %1076 = vmatpush.msrb.mxu3 %v2247_v56  ;;  %v2709_v14 = vand.u32 4294901760, %v2397_v6 }
  0xcd   :  { %979 = vmatpush.msrb.mxu1 %v978_v20  ;;  %1038 = vmatpush.msrb.mxu2 %v2294_v3  ;;  %v2392_v20 = vand.u32 4294901760, %v167_v36  ;;  %v894_v43 = vsub.f32 %v2127_v51, %v2380_v24  ;;  %v1246_v51 = vsub.f32 %v2373_v57, %v2703_v40  ;;  %v89_v1 = vmax.f32 %v69_v21, %v2101_v46 }
  0xce   :  { %878 = vmatpush.msrb.mxu0 %v2227_v18  ;;  %1078 = vmatpush.msrb.mxu3 %v2260_v44  ;;  %v2447_v40 = vand.u32 4294901760, %v163_v7 }
  0xcf   :  { %985 = vmatpush.msrb.mxu1 %v984_v26  ;;  %1041 = vmatpush.msrb.mxu2 %v2306_v50  ;;  %v2707_v26 = vand.u32 4294901760, %v2384_v58  ;;  %v895_v48 = vand.u32 4294901760, %v894_v43  ;;  %v1247_v45 = vand.u32 4294901760, %v1246_v51 }
  0xd0   :  { %880 = vmatpush.msrb.mxu0 %v2247_v56  ;;  %1080 = vmatpush.msrb.mxu3 %v2272_v9 }
  0xd1   :  { %991 = vmatpush.msrb.mxu1 %v990_v39  ;;  %1044 = vmatpush.msrb.mxu2 %v2318_v55  ;;  %v2416_v39 = vsub.f32 %v167_v36, %v2392_v20  ;;  %v2429_v36 = vsub.f32 %v166_v11, %v2403_v25  ;;  %v2445_v11 = vsub.f32 %v165_v61, %v2421_v23 }
  0xd2   :  { %882 = vmatpush.msrb.mxu0 %v2260_v44  ;;  %1082 = vmatpush.msrb.mxu3 %v2284_v54  ;;  %v896_v21 = vsub.f32 %v894_v43, %v895_v48  ;;  %v2457_v61 = vsub.f32 %v164_v63, %v2434_v8 }
  0xd3   :  { %997 = vmatpush.msrb.mxu1 %v996_v0  ;;  %1047 = vmatpush.msrb.mxu2 %v2330_v62  ;;  %2729 = vst [vmem:[#allocation13_spill] sm:$0xff] %v2416_v39  ;;  %v1252_v0 = vsub.f32 %v2384_v58, %v2707_v26  ;;  %v2731_v26 = vand.u32 4294901760, %v2408_v13  ;;  %v109_v62 = vmax.f32 %v89_v1, %v2094_v22 }
  0xd4   :  { %884 = vmatpush.msrb.mxu0 %v2272_v9  ;;  %1084 = vmatpush.msrb.mxu3 %v2296_v32  ;;  %2730 = vst [vmem:[#allocation14_spill] sm:$0xff] %v2429_v36  ;;  %v897_v22 = vand.u32 4294901760, %v896_v21 }
  0xd5   :  { %999 = vmatmul.f32.vlgmr.msrb.gmra.mxu1 %v2380_v24  ;;  %1050 = vmatpush.msrb.mxu2 %v2340_v42  ;;  %v1253_v46 = vand.u32 4294901760, %v1252_v0  ;;  %v2459_v42 = vand.u32 4294901760, %v162_v27  ;;  %v160_v0 = vld [vmem:[#allocation5 + $0x190] sm:$0xff] }
  0xd6   :  { %1166 = vmatpush.msra.mxu1 %v2141_v17  ;;  %886 = vmatpush.msrb.mxu0 %v2284_v54  ;;  %v1258_v17 = vsub.f32 %v2397_v6, %v2709_v14  ;;  %v1264_v14 = vsub.f32 %v2408_v13, %v2731_v26  ;;  %v2470_v26 = vsub.f32 %v163_v7, %v2447_v40  ;;  %v2484_v63 = vand.u32 4294901760, %v160_v0 }
  0xd7   :  { %1086 = vmatpush.msrb.mxu3 %v2308_v29  ;;  %1053 = vmatmul.f32.vlgmr.msrb.gmra.mxu2 %v894_v43  ;;  %v2732_v43 = vand.u32 4294901760, %v2416_v39  ;;  %v2482_v7 = vsub.f32 %v162_v27, %v2459_v42 }
  0xd8   :  { %1168 = vmatpush.msra.mxu1 %v2146_v47  ;;  %1205 = vmatpush.msra.mxu2 %v2356_v30  ;;  %v161_v47 = vld [vmem:[#allocation5 + $0x198] sm:$0xff]  ;;  %v1293_v27 = vand.u32 4294901760, %v2470_v26 }
  0xd9   :  { %888 = vmatpush.msrb.mxu0 %v2296_v32  ;;  %1088 = vmatpush.msrb.mxu3 %v2320_v19  ;;  %v2472_v51 = vand.u32 4294901760, %v161_v47 }
  0xda   :  { %1092 = vmatmul.f32.vlgmr.msrb.gmra.mxu3 %v895_v48  ;;  %1170 = vmatpush.msra.mxu1 %v2156_v34  ;;  %v1270_v48 = vsub.f32 %v2416_v39, %v2732_v43  ;;  %v1259_v34 = vand.u32 4294901760, %v1258_v17  ;;  %v159_v43 = vld [vmem:[#allocation5 + $0x188] sm:$0xff] }
  0xdb   :  { %1207 = vmatpush.msra.mxu2 %v2364_v10  ;;  %1248 = vmatpush.msra.mxu3 %v1247_v45  ;;  %v2733_v45 = vand.u32 4294901760, %v2429_v36  ;;  %v2495_v17 = vsub.f32 %v161_v47, %v2472_v51  ;;  %v2497_v39 = vand.u32 4294901760, %v159_v43  ;;  %v2508_v47 = vsub.f32 %v160_v0, %v2484_v63 }
  0xdc   :  { %890 = vmatpush.msrb.mxu0 %v2308_v29  ;;  %1172 = vmatpush.msra.mxu1 %v2166_v49  ;;  %v1265_v49 = vand.u32 4294901760, %v1264_v14  ;;  %v1271_v21 = vand.u32 4294901760, %v1270_v48 }
  0xdd   :  { %1209 = vmatpush.msra.mxu2 %v2377_v2  ;;  %1254 = vmatpush.msra.mxu3 %v1253_v46  ;;  %v1276_v1 = vsub.f32 %v2429_v36, %v2733_v45  ;;  %v173_v46 = vsel %vm98_vm2, %v109_v62, 0  ;;  %v158_v45 = vld [vmem:[#allocation5 + $0x180] sm:$0xff]  ;;  %v2734_v36 = vand.u32 4294901760, %v2154_v4  ;;  %v2736_v4 = vand.u32 4294901760, %v2164_v15 }
  0xde   :  { %892 = vmatpush.msrb.mxu0 %v2320_v19  ;;  %1174 = vmatpush.msra.mxu1 %v2177_v41  ;;  %v2735_v41 = vand.u32 4294901760, %v2445_v11  ;;  %v2738_v15 = vand.u32 4294901760, %v2175_v28  ;;  %v1305_v0 = vand.u32 4294901760, %v2495_v17 }
  0xdf   :  { %898 = vmatmul.f32.vlgmr.msrb.gmra.mxu0 %v897_v22  ;;  %1211 = vmatpush.msra.mxu2 %v2388_v31  ;;  %v1277_v62 = vand.u32 4294901760, %v1276_v1  ;;  %v2510_v22 = vand.u32 4294901760, %v158_v45  ;;  %v1294_v1 = vsub.f32 %v2470_v26, %v1293_v27 }
  0xe0   :  { %1099 = vmatpush.msra.mxu0 %v2734_v36  ;;  %1260 = vmatpush.msra.mxu3 %v1259_v34  ;;  %v1282_v14 = vsub.f32 %v2445_v11, %v2735_v41  ;;  %v2737_v36 = vand.u32 4294901760, %v2457_v61  ;;  %v1299_v34 = vand.u32 4294901760, %v2482_v7  ;;  %v2512_v41 = vand.u32 4294901760, %v173_v46 }
  0xe1   :  { %1176 = vmatpush.msra.mxu1 %v2190_v38  ;;  %1213 = vmatpush.msra.mxu2 %v2392_v20 }
  0xe2   :  { %1103 = vmatpush.msra.mxu0 %v2736_v4  ;;  %1266 = vmatpush.msra.mxu3 %v1265_v49  ;;  %v1288_v48 = vsub.f32 %v2457_v61, %v2737_v36  ;;  %v1283_v38 = vand.u32 4294901760, %v1282_v14  ;;  %v2523_v49 = vsub.f32 %v159_v43, %v2497_v39  ;;  %v1311_v14 = vand.u32 4294901760, %v2508_v47 }
  0xe3   :  { %1178 = vmatpush.msra.mxu1 %v2204_v5  ;;  %1215 = vmatpush.msra.mxu2 %v2403_v25  ;;  %v2739_v5 = vand.u32 4294901760, %v2186_v53  ;;  %v2534_v4 = vsub.f32 %v158_v45, %v2510_v22  ;;  %v2537_v43 = vsub.f32 %v173_v46, %v2512_v41  ;;  %v2740_v53 = vand.u32 4294901760, %v2200_v12 }
  0xe4   :  { %1107 = vmatpush.msra.mxu0 %v2738_v15  ;;  %1272 = vmatpush.msra.mxu3 %v1271_v21  ;;  %v1289_v28 = vand.u32 4294901760, %v1288_v48  ;;  %v1300_v21 = vsub.f32 %v2482_v7, %v1299_v34  ;;  %v1317_v36 = vand.u32 4294901760, %v2523_v49  ;;  %v2741_v46 = vand.u32 4294901760, %v2218_v37 }
  0xe5   :  { %1180 = vmatpush.msra.mxu1 %v2213_v16  ;;  %1217 = vmatpush.msra.mxu2 %v2421_v23  ;;  %v1295_v16 = vand.u32 4294901760, %v1294_v1  ;;  %v1312_v12 = vsub.f32 %v2508_v47, %v1311_v14  ;;  %v1323_v45 = vand.u32 4294901760, %v2534_v4  ;;  %v1234_v48 = vand.u32 4294901760, %v2537_v43 }
  0xe6   :  { %1111 = vmatpush.msra.mxu0 %v2739_v5  ;;  %1278 = vmatpush.msra.mxu3 %v1277_v62  ;;  %v1306_v62 = vsub.f32 %v2495_v17, %v1305_v0  ;;  %v1318_v15 = vsub.f32 %v2523_v49, %v1317_v36  ;;  %v2745_v5 = vand.u32 4294901760, %v2270_v52  ;;  %v2748_v52 = vand.u32 4294901760, %v2306_v50  ;;  %v2752_v50 = vld [vmem:[#allocation13_spill] sm:$0xff] }
  0xe7   :  { %1182 = vmatpush.msra.mxu1 %v2227_v18  ;;  %1219 = vmatpush.msra.mxu2 %v2434_v8  ;;  %v1301_v18 = vand.u32 4294901760, %v1300_v21  ;;  %v1235_v1 = vsub.f32 %v2537_v43, %v1234_v48  ;;  %v2746_v21 = vand.u32 4294901760, %v2282_v60  ;;  %v2749_v60 = vand.u32 4294901760, %v2318_v55  ;;  %v2755_v55 = vld [vmem:[#allocation14_spill] sm:$0xff] }
  0xe8   :  { %1115 = vmatpush.msra.mxu0 %v2740_v53  ;;  %1284 = vmatpush.msra.mxu3 %v1283_v38  ;;  %v1307_v37 = vand.u32 4294901760, %v1306_v62  ;;  %v2743_v38 = vand.u32 4294901760, %v2241_v33  ;;  %v1319_v33 = vand.u32 4294901760, %v1318_v15 }
  0xe9   :  { %1184 = vmatpush.msra.mxu1 %v2247_v56  ;;  %1221 = vmatpush.msra.mxu2 %v2447_v40  ;;  %v2742_v56 = vand.u32 4294901760, %v2232_v59  ;;  %v1324_v59 = vsub.f32 %v2534_v4, %v1323_v45 }
  0xea   :  { %1119 = vmatpush.msra.mxu0 %v2741_v46  ;;  %1290 = vmatpush.msra.mxu3 %v1289_v28  ;;  %v1236_v28 = vand.u32 4294901760, %v1235_v1 }
  0xeb   :  { %1186 = vmatpush.msra.mxu1 %v2260_v44  ;;  %1223 = vmatpush.msra.mxu2 %v2459_v42  ;;  %v1313_v44 = vand.u32 4294901760, %v1312_v12 }
  0xec   :  { %1123 = vmatpush.msra.mxu0 %v2742_v56  ;;  %1296 = vmatpush.msra.mxu3 %v1295_v16 }
  0xed   :  { %1188 = vmatpush.msra.mxu1 %v2272_v9  ;;  %1225 = vmatpush.msra.mxu2 %v2472_v51  ;;  %v2744_v9 = vand.u32 4294901760, %v2255_v35  ;;  %v2747_v35 = vand.u32 4294901760, %v2294_v3  ;;  %v2750_v3 = vld [vmem:[#allocation11_spill] sm:$0xff] }
  0xee   :  { %1127 = vmatpush.msra.mxu0 %v2743_v38  ;;  %1302 = vmatpush.msra.mxu3 %v1301_v18 }
  0xef   :  { %1190 = vmatpush.msra.mxu1 %v2284_v54  ;;  %1227 = vmatpush.msra.mxu2 %v2484_v63  ;;  %v1325_v54 = vand.u32 4294901760, %v1324_v59 }
  0xf0   :  { %1131 = vmatpush.msra.mxu0 %v2744_v9  ;;  %1308 = vmatpush.msra.mxu3 %v1307_v37 }
  0xf1   :  { %1192 = vmatpush.msra.mxu1 %v2296_v32  ;;  %1229 = vmatpush.msra.mxu2 %v2497_v39  ;;  %v2751_v32 = vand.u32 4294901760, %v2750_v3 }
  0xf2   :  { %1135 = vmatpush.msra.mxu0 %v2745_v5  ;;  %1314 = vmatpush.msra.mxu3 %v1313_v44 }
  0xf3   :  { %1194 = vmatpush.msra.mxu1 %v2308_v29  ;;  %1231 = vmatpush.msra.mxu2 %v2510_v22  ;;  %v2753_v29 = vld [vmem:[#allocation12_spill] sm:$0xff] }
  0xf4   :  { %1139 = vmatpush.msra.mxu0 %v2746_v21  ;;  %1320 = vmatpush.msra.mxu3 %v1319_v33 }
  0xf5   :  { %1336 = vmatpush.msrb.mxu2 %v2373_v57  ;;  %1196 = vmatpush.msra.mxu1 %v2320_v19  ;;  %v2754_v19 = vand.u32 4294901760, %v2753_v29 }
  0xf6   :  { %1143 = vmatpush.msra.mxu0 %v2747_v35  ;;  %1326 = vmatpush.msra.mxu3 %v1325_v54 }
  0xf7   :  { %1198 = vmatmul.f32.vlgmr.msra.gmra.mxu1 %v2380_v24  ;;  %1237 = vmatmul.f32.vlgmr.msra.gmra.mxu2 %v1236_v28 }
  0xf8   :  { %1328 = vmatmul.f32.vlgmr.msra.gmra.mxu3 %v2512_v41  ;;  %1339 = vmatpush.msrb.mxu2 %v2384_v58 }
  0xf9   :  { %1385 = vmatpush.msrb.mxu3 %v2356_v30  ;;  %1485 = vmatpush.msrb.mxu1 %v2356_v30  ;;  %v2757_v30 = vand.u32 4294901760, %v2384_v58  ;;  %v2760_v58 = vand.u32 4294901760, %v2752_v50 }
  0xfa   :  { %1147 = vmatpush.msra.mxu0 %v2748_v52  ;;  %1342 = vmatpush.msrb.mxu2 %v2397_v6 }
  0xfb   :  { %1387 = vmatpush.msrb.mxu3 %v2364_v10  ;;  %1487 = vmatpush.msrb.mxu1 %v2364_v10  ;;  %v2758_v10 = vand.u32 4294901760, %v2397_v6 }
  0xfc   :  { %1151 = vmatpush.msra.mxu0 %v2749_v60  ;;  %1345 = vmatpush.msrb.mxu2 %v2408_v13 }
  0xfd   :  { %1389 = vmatpush.msrb.mxu3 %v2377_v2  ;;  %1489 = vmatpush.msrb.mxu1 %v2377_v2  ;;  %v2756_v2 = vand.u32 4294901760, %v2373_v57  ;;  %v2759_v57 = vand.u32 4294901760, %v2408_v13  ;;  %v2763_v13 = vand.u32 4294901760, %v2457_v61 }
  0xfe   :  { %1155 = vmatpush.msra.mxu0 %v2751_v32  ;;  %1348 = vmatpush.msrb.mxu2 %v2752_v50 }
  0xff   :  { %1391 = vmatpush.msrb.mxu3 %v2388_v31  ;;  %1491 = vmatpush.msrb.mxu1 %v2388_v31 }
 0x100   :  { %1159 = vmatpush.msra.mxu0 %v2754_v19  ;;  %1351 = vmatpush.msrb.mxu2 %v2755_v55 }
 0x101   :  { %1161 = vmatmul.f32.vlgmr.msra.gmra.mxu0 %v2380_v24  ;;  %1393 = vmatpush.msrb.mxu3 %v2392_v20 }
 0x102   :  { %1424 = vmatpush.msrb.mxu0 %v2756_v2  ;;  %1493 = vmatpush.msrb.mxu1 %v2392_v20 }
 0x103   :  { %1354 = vmatpush.msrb.mxu2 %v2445_v11  ;;  %1395 = vmatpush.msrb.mxu3 %v2403_v25 }
 0x104   :  { %1428 = vmatpush.msrb.mxu0 %v2757_v30  ;;  %1495 = vmatpush.msrb.mxu1 %v2403_v25 }
 0x105   :  { %1357 = vmatpush.msrb.mxu2 %v2457_v61  ;;  %1397 = vmatpush.msrb.mxu3 %v2421_v23 }
 0x106   :  { %1432 = vmatpush.msrb.mxu0 %v2758_v10  ;;  %1497 = vmatpush.msrb.mxu1 %v2421_v23  ;;  %v2761_v23 = vand.u32 4294901760, %v2755_v55 }
 0x107   :  { %1360 = vmatpush.msrb.mxu2 %v2470_v26  ;;  %1399 = vmatpush.msrb.mxu3 %v2434_v8 }
 0x108   :  { %1436 = vmatpush.msrb.mxu0 %v2759_v57  ;;  %1499 = vmatpush.msrb.mxu1 %v2434_v8  ;;  %v2762_v8 = vand.u32 4294901760, %v2445_v11 }
 0x109   :  { %1363 = vmatpush.msrb.mxu2 %v2482_v7  ;;  %1401 = vmatpush.msrb.mxu3 %v2447_v40 }
 0x10a   :  { %1440 = vmatpush.msrb.mxu0 %v2760_v58  ;;  %1501 = vmatpush.msrb.mxu1 %v2447_v40 }
 0x10b   :  { %1366 = vmatpush.msrb.mxu2 %v2495_v17  ;;  %1403 = vmatpush.msrb.mxu3 %v2459_v42 }
 0x10c   :  { %1444 = vmatpush.msrb.mxu0 %v2761_v23  ;;  %1503 = vmatpush.msrb.mxu1 %v2459_v42 }
 0x10d   :  { %1369 = vmatpush.msrb.mxu2 %v2508_v47  ;;  %1405 = vmatpush.msrb.mxu3 %v2472_v51  ;;  %v318_v42 = vpop.f32.mrf.mxu1 }
 0x10e   :  { %1448 = vmatpush.msrb.mxu0 %v2762_v8  ;;  %1505 = vmatpush.msrb.mxu1 %v2472_v51 }
 0x10f   :  { %1372 = vmatpush.msrb.mxu2 %v2523_v49  ;;  %1407 = vmatpush.msrb.mxu3 %v2484_v63 }
 0x110   :  { %1452 = vmatpush.msrb.mxu0 %v2763_v13  ;;  %1507 = vmatpush.msrb.mxu1 %v2484_v63 }
 0x111   :  { %1375 = vmatpush.msrb.mxu2 %v2534_v4  ;;  %1409 = vmatpush.msrb.mxu3 %v2497_v39 }
 0x112   :  { %1456 = vmatpush.msrb.mxu0 %v1293_v27  ;;  %1509 = vmatpush.msrb.mxu1 %v2497_v39 }
 0x113   :  { %1378 = vmatmul.f32.vlgmr.msrb.gmra.mxu2 %v2537_v43  ;;  %1411 = vmatpush.msrb.mxu3 %v2510_v22 }
 0x114   :  { %1460 = vmatpush.msrb.mxu0 %v1299_v34  ;;  %1511 = vmatpush.msrb.mxu1 %v2510_v22 }
 0x115   :  { %1415 = vmatmul.f32.vlgmr.msrb.gmra.mxu3 %v1234_v48  ;;  %1513 = vmatmul.f32.vlgmr.msrb.gmra.mxu1 %v2512_v41  ;;  %v217_v40 = vpop.f32.mrf.mxu0  ;;  %v372_v31 = vpop.f32.mrf.mxu2 }
 0x116   :  { %1464 = vmatpush.msrb.mxu0 %v1305_v0  ;;  %v319_v24 = vadd.f32 %v318_v42, %v217_v40  ;;  %v517_v51 = vpop.f32.mrf.mxu1 }
 0x117   :  { %v411_v6 = vpop.f32.mrf.mxu3 }
 0x118   :  { %1468 = vmatpush.msrb.mxu0 %v1311_v14  ;;  %v373_v20 = vadd.f32 %v372_v31, %v319_v24 }
 0x11a   :  { %1472 = vmatpush.msrb.mxu0 %v1317_v36  ;;  %v412_v39 = vadd.f32 %v411_v6, %v373_v20 }
 0x11c   :  { %1476 = vmatpush.msrb.mxu0 %v1323_v45 }
 0x11d   :  { %1478 = vmatmul.f32.vlgmr.msrb.gmra.mxu0 %v2512_v41 }
 0x11f   :  { %v480_v25 = vpop.f32.mrf.mxu0 }
 0x120   :  { %v481_v11 = vadd.f32 %v480_v25, %v412_v39 }
 0x121   :  { %v659_v17 = vpop.f32.mrf.mxu3 }
 0x122   :  { %v518_v63 = vadd.f32 %v517_v51, %v481_v11 }
 0x125   :  { %v558_v61 = vpop.f32.mrf.mxu2 }
 0x126   :  { %v559_v26 = vadd.f32 %v558_v61, %v518_v63 }
 0x128   :  { %v660_v27 = vadd.f32 %v659_v17, %v559_v26 }
 0x130   :  { %v752_v47 = vpop.f32.mrf.mxu1 }
 0x138   :  { %v821_v41 = vpop.f32.mrf.mxu2 }
 0x13a   :  { %v713_v7 = vpop.f32.mrf.mxu0 }
 0x13b   :  { %v714_v34 = vadd.f32 %v713_v7, %v660_v27  ;;  %v858_v49 = vpop.f32.mrf.mxu3 }
 0x13d   :  { %v753_v22 = vadd.f32 %v752_v47, %v714_v34 }
 0x13f   :  { %v822_v0 = vadd.f32 %v821_v41, %v753_v22 }
 0x141   :  { %v859_v4 = vadd.f32 %v858_v49, %v822_v0 }
 0x152   :  { %v1000_v53 = vpop.f32.mrf.mxu1 }
 0x15a   :  { %v1054_v62 = vpop.f32.mrf.mxu2 }
 0x15c   :  { %v899_v14 = vpop.f32.mrf.mxu0 }
 0x15d   :  { %v900_v43 = vadd.f32 %v899_v14, %v859_v4  ;;  %v1093_v46 = vpop.f32.mrf.mxu3 }
 0x15f   :  { %v1001_v16 = vadd.f32 %v1000_v53, %v900_v43 }
 0x161   :  { %v1055_v36 = vadd.f32 %v1054_v62, %v1001_v16 }
 0x163   :  { %v1094_v12 = vadd.f32 %v1093_v46, %v1055_v36 }
 0x174   :  { %v1199_v48 = vpop.f32.mrf.mxu1 }
 0x17a   :  { %v1238_v37 = vpop.f32.mrf.mxu2 }
 0x17b   :  { %v1329_v15 = vpop.f32.mrf.mxu3 }
 0x17e   :  { %v1162_v18 = vpop.f32.mrf.mxu0 }
 0x17f   :  { %v1163_v45 = vadd.f32 %v1162_v18, %v1094_v12 }
 0x181   :  { %v1200_v56 = vadd.f32 %v1199_v48, %v1163_v45 }
 0x183   :  { %v1239_v38 = vadd.f32 %v1238_v37, %v1200_v56 }
 0x185   :  { %v1330_v44 = vadd.f32 %v1329_v15, %v1239_v38 }
 0x192   :  { %v1514_v28 = vpop.f32.mrf.mxu1 }
 0x196   :  { %v1379_v59 = vpop.f32.mrf.mxu2 }
 0x197   :  { %v1380_v1 = vadd.f32 %v1379_v59, %v1330_v44 }
 0x198   :  { %v1416_v9 = vpop.f32.mrf.mxu3 }
 0x199   :  { %v1417_v33 = vadd.f32 %v1416_v9, %v1380_v1 }
 0x19a   :  { %v1479_v5 = vpop.f32.mrf.mxu0 }
 0x19b   :  { %v1480_v54 = vadd.f32 %v1479_v5, %v1417_v33 }
 0x19d   :  { %v1515_v21 = vadd.f32 %v1514_v28, %v1480_v54 }
 0x19f   :  { %1517 = vst [vmem:[#allocation7] sm:$0xff] %v1515_v21 }
 0x1a0   :  { %1528 = dma.vmem_to_hbm [thread:$0]  %s1524_s23, 128, %s1526_s26, [#allocation4]  }
 0x1a1   :  { %1621 = dma.done.wait [#allocation4], 128  }
 0x1a2   :  { %1622 = vsyncadd [#allocation4], 4294967168 }
 0x1a3   :  { %1533 = vsyncpa [#allocation3], 1 }
 0x1a4   :  { %1534 = vsyncpa [#allocation6], 1 }
 0x1a5   :  { %1535 = vsyncpa [#allocation4], 1 }

</bundles_post_ra>
